<compile_context>
chip_gen: v7x
topology: tpu7x:2x2x1
jax: 0.10.0
libtpu: 0.0.40
codegen_flags: <defaults>
</compile_context>

<pallas_src>
import functools

import numpy as np
import jax
import jax.numpy as jnp
from jax import lax
from jax.experimental import pallas as pl
from jax.experimental.pallas import tpu as pltpu

_LANE = 128
_BIG = 3.0e38   # ~f32 max; exp(vnorm * _BIG) underflows to exactly 0


def _pad_to(n, m):
    return ((n + m - 1) // m) * m


def _pick_rank_chunk(c_pad):
    for c in (512, 256, 128):
        if c_pad >= c and c_pad % c == 0:
            return c
    return c_pad


def _vmem_params(nbytes_est):
    limit = int(min(64 * 1024 * 1024, max(16 * 1024 * 1024, nbytes_est)))
    return pltpu.CompilerParams(vmem_limit_bytes=limit)


# --------------------------------------------------------------------------
# Kernels
# --------------------------------------------------------------------------
def _costs_kernel(x_col_ref, means_t_ref, costs_ref):
    # x_col_ref:   (D, 1)  f32  query, features on sublanes
    # means_t_ref: (D, Cp) f32  cluster means, clusters on lanes
    # costs_ref:   (1, Cp) f32  squared euclidean distances (lane-dense)
    d = means_t_ref[...] - x_col_ref[...]
    costs_ref[...] = jnp.sum(d * d, axis=0, keepdims=True)


def _magnet_kernel(x_col_ref, means_t_ref, onehot_ref, costs_ref, probs_ref,
                   *, vnorm, l_top, c_real, truncate, rank_chunk):
    # x_col_ref:   (D, 1)   f32
    # means_t_ref: (D, Cp)  f32  clusters on lanes (single layout, single DMA)
    # onehot_ref:  (Cp, K)  f32  onehot[c, k] = 1 iff class(cluster c) == k
    # costs_ref:   (1, Cp)  f32  out
    # probs_ref:   (1, K)   f32  out
    # vnorm, l_top, c_real, truncate, rank_chunk are Python (trace-time) consts.
    D, Cp = means_t_ref.shape

    d = means_t_ref[...] - x_col_ref[...]                        # (D, Cp)
    costs = jnp.sum(d * d, axis=0, keepdims=True)                # (1, Cp)
    costs_ref[...] = costs

    # Mask padded clusters to a huge distance so they never contribute to the
    # softmax-style sum nor to the top-L selection.
    if c_real != Cp:
        valid = lax.broadcasted_iota(jnp.int32, (1, Cp), 1) < c_real
        costs_m = jnp.where(valid, costs, _BIG)
    else:
        costs_m = costs

    normalised = jnp.exp(np.float32(vnorm) * costs_m)            # (1, Cp)

    if truncate:
        # Top-L mask via pairwise ranking (replaces torch.sort + truncation):
        #   rank[i] = #{ j : cost[j] < cost[i]
        #                    or (cost[j] == cost[i] and j < i) }
        # keep cluster i iff rank[i] < L.  Chunked over j (sublane axis) so the
        # live intermediate is (rank_chunk, Cp) instead of (Cp, Cp).
        row_r = lax.broadcasted_iota(jnp.int32, (rank_chunk, Cp), 0)
        lane_i = lax.broadcasted_iota(jnp.int32, (rank_chunk, Cp), 1)
        rank = jnp.zeros((1, Cp), jnp.float32)
        for c in range(Cp // rank_chunk):
            j0 = c * rank_chunk
            jglob = row_r + j0                                    # global j per row
            # Exact, relayout-free "transpose" of the j-chunk of costs:
            # cj[r, 0] = costs_m[0, j0 + r]  (sum of one selected value + zeros)
            cj = jnp.sum(jnp.where(lane_i == jglob, costs_m, 0.0),
                         axis=1, keepdims=True)                   # (chunk, 1)
            before = (cj < costs_m) | ((cj == costs_m) & (jglob < lane_i))
            rank = rank + jnp.sum(before.astype(jnp.float32), axis=0,
                                  keepdims=True)                  # (1, Cp)
        normalised = jnp.where(rank < np.float32(l_top), normalised, 0.0)

    # Per-class sum of normalised costs: one (1, Cp) x (Cp, K) MXU dot with the
    # clusters (lane-dense) as the contraction axis.
    numerator = jnp.dot(normalised, onehot_ref[...],
                        preferred_element_type=jnp.float32)       # (1, K)
    denom = jnp.sum(normalised, keepdims=True)                    # (1, 1)
    probs_ref[...] = numerator * pl.reciprocal(denom + 1e-8)


# --------------------------------------------------------------------------
# pallas_call wrappers
# --------------------------------------------------------------------------
def _call_costs(x_col, means_t):
    D, Cp = means_t.shape
    est = 4 * (3 * D * Cp + 8 * Cp + 4096)
    return pl.pallas_call(
        _costs_kernel,
        out_shape=jax.ShapeDtypeStruct((1, Cp), jnp.float32),
        in_specs=[pl.BlockSpec(memory_space=pltpu.MemorySpace.VMEM)] * 2,
        out_specs=pl.BlockSpec(memory_space=pltpu.MemorySpace.VMEM),
        compiler_params=_vmem_params(est),
    )(x_col, means_t)


def _call_magnet(x_col, means_t, onehot, *, vnorm, l_top, c_real):
    D, Cp = means_t.shape
    K = onehot.shape[1]
    truncate = int(l_top) < int(c_real)
    rank_chunk = _pick_rank_chunk(Cp) if truncate else 0
    kernel = functools.partial(
        _magnet_kernel, vnorm=float(vnorm), l_top=int(l_top),
        c_real=int(c_real), truncate=truncate, rank_chunk=rank_chunk)
    est = 4 * (3 * D * Cp + 2 * Cp * K + 4 * max(rank_chunk, 1) * Cp
               + 16 * Cp + 8192)
    return pl.pallas_call(
        kernel,
        out_shape=(jax.ShapeDtypeStruct((1, Cp), jnp.float32),   # costs
                   jax.ShapeDtypeStruct((1, K), jnp.float32)),   # probs
        in_specs=[pl.BlockSpec(memory_space=pltpu.MemorySpace.VMEM)] * 3,
        out_specs=(pl.BlockSpec(memory_space=pltpu.MemorySpace.VMEM),
                   pl.BlockSpec(memory_space=pltpu.MemorySpace.VMEM)),
        compiler_params=_vmem_params(est),
    )(x_col, means_t, onehot)


# --------------------------------------------------------------------------
# Jitted forward (style / L / vnorm / real C are trace-time constants)
# --------------------------------------------------------------------------
@functools.partial(jax.jit,
                   static_argnames=("style", "l_top", "vnorm", "c_real"))
def _magnet_forward(x, target, means_t, onehot, classes,
                    *, style, l_top, vnorm, c_real):
    D = means_t.shape[0]
    x_col = x.reshape(D, 1)
    if style == "closest":
        costs = _call_costs(x_col, means_t)                      # (1, Cp)
        pred = classes[jnp.argmin(costs[0, :c_real])].astype(jnp.int32)
    else:
        _, probs = _call_magnet(x_col, means_t, onehot,
                                vnorm=vnorm, l_top=l_top, c_real=c_real)
        pred = jnp.argmax(probs[0]).astype(jnp.int32)
    acc = (pred == target).astype(jnp.float32)
    return jnp.zeros(1, jnp.float32), jnp.zeros(1, jnp.float32), pred, acc


class MagnetLossEval:
    """JAX/Pallas port of losses/magnet_loss.py::MagnetLossEval (forward only).

    Set `cluster_means`, `cluster_classes`, `variance` (or call `set_clusters`)
    before calling.  Device-side constants are built once and cached; call
    `set_clusters()` again if they change.
    """

    def __init__(self, L=128, style="magnet"):
        self.cluster_means = None     # np.ndarray (C, D)
        self.cluster_classes = None   # np.ndarray (C,) int
        self.variance = None          # python float
        self.L = L
        self.style = style
        self._prepared = None

    def set_clusters(self, cluster_means, cluster_classes, variance):
        self.cluster_means = cluster_means
        self.cluster_classes = cluster_classes
        self.variance = variance
        self._prepared = None
        self._prepare()
        return self

    def _prepare(self):
        if self._prepared is None:
            means_np = np.asarray(self.cluster_means, dtype=np.float32)   # (C, D)
            classes_np = np.asarray(self.cluster_classes).astype(np.int64)
            C, D = means_np.shape
            K = int(np.max(classes_np)) + 1        # same rule as torch module
            Cp = max(_LANE, _pad_to(C, _LANE))     # lane-pad the cluster axis
            means_t_np = np.zeros((D, Cp), np.float32)
            means_t_np[:, :C] = means_np.T
            onehot_np = np.zeros((Cp, K), np.float32)
            onehot_np[np.arange(C), classes_np] = 1.0   # padded rows stay zero
            self._prepared = dict(
                means_t=jnp.asarray(means_t_np),                          # (D, Cp)
                onehot=jnp.asarray(onehot_np),                            # (Cp, K)
                classes=jnp.asarray(classes_np.astype(np.int32)),         # (C,)
                c_real=C,
                vnorm=float(-1.0 / (2.0 * float(self.variance) ** 2)),
            )
        return self._prepared

    def __call__(self, x, target):
        assert self.cluster_means is not None
        assert self.cluster_classes is not None
        assert self.variance is not None
        p = self._prepare()
        x = jnp.asarray(x, jnp.float32)
        target = jnp.asarray(target, jnp.int32)
        # TODO(synk): batch queries (B, D) to amortize the means DMA; the torch
        # module's squeeze() path is single-query, so that interface is kept.
        return _magnet_forward(x, target, p["means_t"], p["onehot"], p["classes"],
                               style=self.style, l_top=int(self.L),
                               vnorm=p["vnorm"], c_real=p["c_real"])


if __name__ == "__main__":
    key = jax.random.PRNGKey(0)
    k_means, k_x = jax.random.split(key)

    C, D, K = 32, 64, 4          # clusters, embedding dim, classes
    cluster_means = np.asarray(jax.random.normal(k_means, (C, D), jnp.float32))
    cluster_classes = (np.arange(C) % K).astype(np.int64)
    variance = 8.0
    x = jax.random.normal(k_x, (1, D), jnp.float32)   # single query
    target = 2

    # ----- float64 numpy reference -----
    means64 = cluster_means.astype(np.float64)
    x64 = np.asarray(x, np.float64).reshape(-1)
    costs_np = ((means64 - x64[None, :]) ** 2).sum(1)                 # (C,)
    vn = -1.0 / (2.0 * variance ** 2)
    onehot_kc = (cluster_classes[None, :] == np.arange(K)[:, None]).astype(np.float64)

    def ref_probs(L):
        keep = np.argsort(costs_np)[: min(L, C)]
        nc = np.exp(vn * costs_np[keep])
        return (onehot_kc[:, keep] @ nc) / (nc.sum() + 1e-8)

    # ----- magnet style: default (L >= C) and truncated (L < C) paths -----
    for L in (128, 8):
        mod = MagnetLossEval(L=L, style="magnet")
        mod.set_clusters(cluster_means, cluster_classes, variance)
        out = mod(x, target)
        jax.block_until_ready(out)

        probs_ref_np = ref_probs(L)
        pred_ref = int(np.argmax(probs_ref_np))
        assert int(out[2]) == pred_ref, (L, int(out[2]), pred_ref)
        assert float(out[3]) == float(pred_ref == target), (L, float(out[3]))

        # also check the raw kernel outputs numerically
        p = mod._prepare()
        x_col = jnp.asarray(x, jnp.float32).reshape(D, 1)
        costs_k, probs_k = _call_magnet(x_col, p["means_t"], p["onehot"],
                                        vnorm=p["vnorm"], l_top=L,
                                        c_real=p["c_real"])
        jax.block_until_ready((costs_k, probs_k))
        np.testing.assert_allclose(np.asarray(costs_k)[0, :C], costs_np,
                                   rtol=1e-4, atol=1e-4)
        np.testing.assert_allclose(np.asarray(probs_k)[0], probs_ref_np,
                                   rtol=1e-4, atol=1e-6)

    # ----- closest style (costs-only kernel) -----
    mod = MagnetLossEval(style="closest")
    mod.set_clusters(cluster_means, cluster_classes, variance)
    out = mod(x, target)
    jax.block_until_ready(out)
    pred_ref = int(cluster_classes[int(np.argmin(costs_np))])
    assert int(out[2]) == pred_ref, (int(out[2]), pred_ref)
    assert float(out[3]) == float(pred_ref == target)

    print("KERNEL_OK")
</pallas_src>

<mosaic_0001>
module attributes {stable_mosaic.version = 11 : i64} {
  func.func @_magnet_kernel(%arg0: memref<64x1xf32, #tpu.memory_space<vmem>>, %arg1: memref<64x128xf32, #tpu.memory_space<vmem>>, %arg2: memref<128x4xf32, #tpu.memory_space<vmem>>, %arg3: memref<1x128xf32, #tpu.memory_space<vmem>>, %arg4: memref<1x4xf32, #tpu.memory_space<vmem>>) attributes {dimension_semantics = [], scalar_prefetch = 0 : i64, scratch_operands = 0 : i64, tpu.core_type = #tpu.core_type<tc>} {
    %c0 = arith.constant 0 : index
    %c0_0 = arith.constant 0 : index
    %0 = vector.load %arg1[%c0, %c0_0] : memref<64x128xf32, #tpu.memory_space<vmem>>, vector<64x128xf32>
    %c0_1 = arith.constant 0 : index
    %c0_2 = arith.constant 0 : index
    %1 = vector.load %arg0[%c0_1, %c0_2] : memref<64x1xf32, #tpu.memory_space<vmem>>, vector<64x1xf32>
    %2 = vector.broadcast %1 : vector<64x1xf32> to vector<64x128xf32>
    %3 = arith.subf %0, %2 : vector<64x128xf32>
    %4 = arith.mulf %3, %3 : vector<64x128xf32>
    %cst = arith.constant dense<0.000000e+00> : vector<128xf32>
    %5 = vector.multi_reduction <add>, %4, %cst [0] : vector<64x128xf32> to vector<128xf32>
    %6 = vector.shape_cast %5 : vector<128xf32> to vector<1x128xf32>
    %c0_3 = arith.constant 0 : index
    %c0_4 = arith.constant 0 : index
    %7 = vector.load %arg3[%c0_3, %c0_4] : memref<1x128xf32, #tpu.memory_space<vmem>>, vector<1x128xf32>
    tpu.vector_store %arg3[%c0_3, %c0_4], %6 {strides = array<i32>} : memref<1x128xf32, #tpu.memory_space<vmem>>, vector<1x128xf32>,
    %8 = tpu.iota {dimensions = array<i32: 1>} : vector<1x128xi32>
    %c32_i32 = arith.constant 32 : i32
    %9 = vector.broadcast %c32_i32 : i32 to vector<1x128xi32>
    %10 = arith.cmpi slt, %8, %9 : vector<1x128xi32>
    %cst_5 = arith.constant 3.000000e+38 : f32
    %11 = vector.broadcast %cst_5 : f32 to vector<1x128xf32>
    %12 = arith.select %10, %6, %11 : vector<1x128xi1>, vector<1x128xf32>
    %cst_6 = arith.constant -7.812500e-03 : f32
    %13 = vector.broadcast %cst_6 : f32 to vector<1x128xf32>
    %14 = arith.mulf %13, %12 : vector<1x128xf32>
    %15 = math.exp %14 : vector<1x128xf32>
    %c0_7 = arith.constant 0 : index
    %c0_8 = arith.constant 0 : index
    %16 = vector.load %arg2[%c0_7, %c0_8] : memref<128x4xf32, #tpu.memory_space<vmem>>, vector<128x4xf32>
    %cst_9 = arith.constant dense<0.000000e+00> : vector<1x4xf32>
    %17 = tpu.matmul %15, %16, %cst_9 {dimension_numbers = #tpu.dot_dimension_numbers<[1], [0], [0], [1], [0, 0, 1, 1], [], []>} : vector<1x128xf32>, vector<128x4xf32>, vector<1x4xf32> -> vector<1x4xf32>
    %18 = vector.shape_cast %15 : vector<1x128xf32> to vector<1x1x128xf32>
    %cst_10 = arith.constant dense<0.000000e+00> : vector<1xf32>
    %19 = vector.multi_reduction <add>, %18, %cst_10 [1, 2] : vector<1x1x128xf32> to vector<1xf32>
    %20 = vector.shape_cast %19 : vector<1xf32> to vector<1x1x1xf32>
    %21 = vector.extract %20[0, 0, 0] : f32 from vector<1x1x1xf32>
    %22 = vector.broadcast %21 : f32 to vector<1x1xf32>
    %cst_11 = arith.constant 9.99999993E-9 : f32
    %23 = vector.broadcast %cst_11 : f32 to vector<1x1xf32>
    %24 = arith.addf %22, %23 : vector<1x1xf32>
    %25 = tpu.reciprocal %24 : vector<1x1xf32> -> vector<1x1xf32>
    %26 = vector.broadcast %25 : vector<1x1xf32> to vector<1x4xf32>
    %27 = arith.mulf %17, %26 : vector<1x4xf32>
    %c0_12 = arith.constant 0 : index
    %c0_13 = arith.constant 0 : index
    %28 = vector.load %arg4[%c0_12, %c0_13] : memref<1x4xf32, #tpu.memory_space<vmem>>, vector<1x4xf32>
    tpu.vector_store %arg4[%c0_12, %c0_13], %27 {strides = array<i32>} : memref<1x4xf32, #tpu.memory_space<vmem>>, vector<1x4xf32>,
    return
  }
}

</mosaic_0001>

<bundles_post_ra>
// kernel: _magnet_forward.1
= control target key start
LH: loop header
LB: loop body
LE: loop exit
PB: predicated region body
PF: predicated region fallthrough
CT: control target
= control target key end

     0   :  { %v344_v2 = vmov 0   ;;  %s485_s0 = inlined_call_operand.vmem [shape: f32[64,1], index: 0, kind: input, shape index: {}]   ;;  %s486_s1 = inlined_call_operand.vmem [shape: f32[64,128], index: 1, kind: input, shape index: {}]   ;;  %s487_s2 = inlined_call_operand.vmem [shape: f32[128,4], index: 2, kind: input, shape index: {}]   ;;  %s488_s3 = inlined_call_operand.hbm [shape: f32[1,128], index: 3, kind: output, shape index: {0}]   ;;  %s489_s4 = inlined_call_operand.vmem [shape: f32[1,4], index: 4, kind: output, shape index: {1}]  }
   0x1   :  { %v27_v0 = vld [vmem:[%s485_s0 + $0x10] sm:$0xff]  ;;  %v25_v1 = vld [vmem:[%s485_s0] sm:$0xff]  ;;  %315 = vset.pattern.permute.xlu1 %v344_v2  ;;  %314 = vset.pattern.permute.xlu0 %v344_v2  ;;  %v28_v3 = vld [vmem:[%s485_s0 + $0x18] sm:$0xff] }
   0x2   :  { %45 = vperm.xlu1 %315, %v27_v0   ;;  %35 = vperm.xlu0 %314, %v25_v1   ;;  %v26_v4 = vld [vmem:[%s485_s0 + $0x8] sm:$0xff] }
   0x3   :  { %10 = vsyncpa [#allocation3], 0  ;;  %v30_v5 = vld [vmem:[%s485_s0 + $0x28] sm:$0xff]  ;;  %v29_v6 = vld [vmem:[%s485_s0 + $0x20] sm:$0xff]  ;;  %v345_v12 = vmov 0.0|0.0   ;;  %vm346_vm0 = vmmov 0  }
   0x4   :  { %v32_v7 = vld [vmem:[%s485_s0 + $0x38] sm:$0xff]  ;;  %v31_v8 = vld [vmem:[%s485_s0 + $0x30] sm:$0xff]  ;;  %v110_v9 = vld [vmem:[%s487_s2] sm:$0xff]  ;;  %283 = vmatprep.subr.bf16.mxu0 %v345_v12  ;;  %v347_v33 = vmov 0.0   ;;  %vm196_vm2 = vcmask 1040384  }
   0x5   :  { %v111_v10 = vld [vmem:[%s487_s2 + $0x8] sm:$0xff]  ;;  %v112_v13 = vld [vmem:[%s487_s2 + $0x10] sm:$0xff]  ;;  %v113_v14 = vld [vmem:[%s487_s2 + $0x18] sm:$0xff]  ;;  %280 = vmatprep.mubr.msk.f32.mxu0 %vm346_vm0, %v347_v33 }
   0x6   :  { %50 = vperm.xlu1 %315, %v28_v3   ;;  %40 = vperm.xlu0 %314, %v26_v4   ;;  %v284_v11 = vpack.c.bf16 %v111_v10, %v110_v9  ;;  %v287_v15 = vpack.c.bf16 %v113_v14, %v112_v13  ;;  %v114_v16 = vld [vmem:[%s487_s2 + $0x20] sm:$0xff]  ;;  %v115_v17 = vld [vmem:[%s487_s2 + $0x28] sm:$0xff]  ;;  %v116_v19 = vld [vmem:[%s487_s2 + $0x30] sm:$0xff] }
   0x7   :  { %v290_v18 = vpack.c.bf16 %v115_v17, %v114_v16  ;;  %v117_v20 = vld [vmem:[%s487_s2 + $0x38] sm:$0xff]  ;;  %v118_v22 = vld [vmem:[%s487_s2 + $0x40] sm:$0xff]  ;;  %v119_v23 = vld [vmem:[%s487_s2 + $0x48] sm:$0xff] }
   0x8   :  { %285 = vmatpush3.bf16.msra.mxu0 %v284_v11  ;;  %v293_v21 = vpack.c.bf16 %v117_v20, %v116_v19  ;;  %v296_v24 = vpack.c.bf16 %v119_v23, %v118_v22  ;;  %v120_v25 = vld [vmem:[%s487_s2 + $0x50] sm:$0xff]  ;;  %v121_v26 = vld [vmem:[%s487_s2 + $0x58] sm:$0xff]  ;;  %v122_v28 = vld [vmem:[%s487_s2 + $0x60] sm:$0xff]  ;;  %v103_v11 = vlaneseq }
   0x9   :  { %286 = vmatprep.subr.bf16.mxu0 %v345_v12  ;;  %v299_v27 = vpack.c.bf16 %v121_v26, %v120_v25  ;;  %v123_v29 = vld [vmem:[%s487_s2 + $0x68] sm:$0xff]  ;;  %v124_v31 = vld [vmem:[%s487_s2 + $0x70] sm:$0xff]  ;;  %v125_v32 = vld [vmem:[%s487_s2 + $0x78] sm:$0xff] }
   0xa   :  { %60 = vperm.xlu1 %315, %v30_v5   ;;  %55 = vperm.xlu0 %314, %v29_v6   ;;  %v302_v30 = vpack.c.bf16 %v123_v29, %v122_v28  ;;  %v305_v34 = vpack.c.bf16 %v125_v32, %v124_v31  ;;  %v17_v37 = vld [vmem:[%s486_s1] sm:$0xff]  ;;  %v19_v38 = vld [vmem:[%s486_s1 + $0x10] sm:$0xff]  ;;  %v18_v39 = vld [vmem:[%s486_s1 + $0x8] sm:$0xff]  ;;  %v104_v14 = vand.u32 127, %v103_v11 }
   0xb   :  { %v20_v42 = vld [vmem:[%s486_s1 + $0x18] sm:$0xff]  ;;  %v21_v46 = vld [vmem:[%s486_s1 + $0x20] sm:$0xff]  ;;  %v22_v51 = vld [vmem:[%s486_s1 + $0x28] sm:$0xff] }
   0xc   :  { %288 = vmatpush3.bf16.msra.mxu0 %v287_v15  ;;  %v23_v56 = vld [vmem:[%s486_s1 + $0x30] sm:$0xff]  ;;  %v24_v61 = vld [vmem:[%s486_s1 + $0x38] sm:$0xff]  ;;  %vm105_vm1 = vcmp.lt.s32.totalorder %v104_v14, 32  ;;  %s348_s1 = smov [#allocation2]  }
   0xd   :  { %289 = vmatprep.subr.bf16.mxu0 %v345_v12  ;;  %s219_s24 = sshll.u32 %s348_s1, 4  ;;  %s220_s24 = int_to_ptr.vmem [resolvable:$true] %s219_s24 }
   0xe   :  { %70 = vperm.xlu1 %315, %v32_v7   ;;  %65 = vperm.xlu0 %314, %v31_v8   ;;  %s320_s25 = scalar_lea.vmem %s220_s24, 16  ;;  %s324_s26 = scalar_lea.vmem %s220_s24, 32 }
   0xf   :  { %p321_p0 = scmp.ne.s32.totalorder %s220_s24, %s320_s25  ;;  %p325_p1 = scmp.lt.s32.totalorder %s220_s24, %s220_s24 }
  0x10   :  { %291 = vmatpush3.bf16.msra.mxu0 %v290_v18  ;;  %p326_p2 = scmp.lt.s32.totalorder %s324_s26, %s320_s25 }
  0x11   :  { %292 = vmatprep.subr.bf16.mxu0 %v345_v12 }
  0x12   :  { %p327_p3 = por %p326_p2, %p325_p1 }
  0x14   :  { %294 = vmatpush3.bf16.msra.mxu0 %v293_v21  ;;  %p328_p4 = pnand %p327_p3, %p321_p0 }
  0x15   :  { %295 = vmatprep.subr.bf16.mxu0 %v345_v12 }
  0x18   :  { %297 = vmatpush3.bf16.msra.mxu0 %v296_v24 }
  0x19   :  { %298 = vmatprep.subr.bf16.mxu0 %v345_v12 }
  0x1c   :  { %300 = vmatpush3.bf16.msra.mxu0 %v299_v27 }
  0x1d   :  { %301 = vmatprep.subr.bf16.mxu0 %v345_v12 }
  0x20   :  { %303 = vmatpush3.bf16.msra.mxu0 %v302_v30 }
  0x21   :  { %304 = vmatprep.subr.bf16.mxu0 %v345_v12 }
  0x24   :  { %306 = vmatpush3.bf16.msra.mxu0 %v305_v34 }
  0x81   :  { %v46_v35 = vpop.permute.xlu1 %45  ;;  %v36_v36 = vpop.permute.xlu0 %35 }
  0x82   :  { %v73_v40 = vsub.f32 %v17_v37, %v36_v36  ;;  %v75_v44 = vsub.f32 %v19_v38, %v46_v35 }
  0x84   :  { %v81_v47 = vmul.f32 %v73_v40, %v73_v40  ;;  %v83_v53 = vmul.f32 %v75_v44, %v75_v44 }
  0x85   :  { %v51_v41 = vpop.permute.xlu1 %50  ;;  %v41_v43 = vpop.permute.xlu0 %40 }
  0x86   :  { %v74_v45 = vsub.f32 %v18_v39, %v41_v43  ;;  %v76_v48 = vsub.f32 %v20_v42, %v51_v41 }
  0x88   :  { %v82_v49 = vmul.f32 %v74_v45, %v74_v45  ;;  %v84_v57 = vmul.f32 %v76_v48, %v76_v48 }
  0x89   :  { %v61_v50 = vpop.permute.xlu1 %60  ;;  %v56_v52 = vpop.permute.xlu0 %55 }
  0x8a   :  { %v89_v54 = vadd.f32 %v82_v49, %v81_v47  ;;  %v77_v55 = vsub.f32 %v21_v46, %v56_v52  ;;  %v78_v59 = vsub.f32 %v22_v51, %v61_v50 }
  0x8c   :  { %v90_v58 = vadd.f32 %v89_v54, %v83_v53  ;;  %v85_v63 = vmul.f32 %v77_v55, %v77_v55  ;;  %v86_v2 = vmul.f32 %v78_v59, %v78_v59 }
  0x8d   :  { %v71_v60 = vpop.permute.xlu1 %70  ;;  %v66_v62 = vpop.permute.xlu0 %65 }
  0x8e   :  { %v91_v0 = vadd.f32 %v90_v58, %v84_v57  ;;  %v79_v1 = vsub.f32 %v23_v56, %v66_v62  ;;  %v80_v4 = vsub.f32 %v24_v61, %v71_v60 }
  0x90   :  { %v92_v3 = vadd.f32 %v91_v0, %v85_v63  ;;  %v87_v5 = vmul.f32 %v79_v1, %v79_v1  ;;  %v88_v7 = vmul.f32 %v80_v4, %v80_v4 }
  0x92   :  { %v93_v6 = vadd.f32 %v92_v3, %v86_v2 }
  0x94   :  { %v94_v8 = vadd.f32 %v93_v6, %v87_v5 }
  0x96   :  { %v95_v9 = vadd.f32 %v94_v8, %v88_v7 }
  0x98   :  { %v96_v10 = vrot.slane %v95_v9, 4 }
  0x9a   :  { %v97_v12 = vadd.f32 %v96_v10, %v95_v9 }
  0x9c   :  { %v98_v13 = vrot.slane %v97_v12, 2 }
  0x9e   :  { %v99_v15 = vadd.f32 %v98_v13, %v97_v12 }
  0xa0   :  { %v100_v16 = vrot.slane %v99_v15, 1 }
  0xa2   :  { %v101_v17 = vadd.f32 %v100_v16, %v99_v15 }
  0xa4   :  { %v106_v18 = vsel %vm105_vm1, %v101_v17, 3e+38  ;;  %102 = vst [vmem:[#allocation2] sm:$0x1] %v101_v17 }
  0xa5   :  { %v107_v19 = vmul.f32 -0.0078125, %v106_v18 }
  0xa7   :  { %v108_v20 = vmul.f32 1.442695, %v107_v19 }
  0xa9   :  { %316 = vpow2.f32 %v108_v20 }
  0xb3   :  { %v317_v21 = vpop.eup %316 }
  0xb4   :  { %281 = vmatmul.mubr.f32.vlgmr.msra.gmra.mrb[0].mxu0 %v317_v21  ;;  %v197_v22 = vsel %vm196_vm2, %v317_v21, 0.0 }
  0xb5   :  { %198 = vadd.xlane.f32.xlu0 %v197_v22 }
  0xb6   :  { %331 = shalt.err (!%p328_p4)
}
  0xb7   :  { %s332_s29 = scalar_lea.hbm %s488_s3, 16 }
  0xb8   :  { %p333_p5 = scmp.ne.s32.totalorder %s488_s3, %s332_s29  ;;  %p336_p6 = scmp.lt.u32.totalorder %s332_s29, %s488_s3 }
  0xba   :  { %p338_p7 = pnand %p336_p6, %p333_p5 }
  0xbc   :  { %341 = shalt.err (!%p338_p7)
}
  0xbd   :  { %222 = dma.vmem_to_hbm [thread:$0]  %s220_s24, 16, %s488_s3, [#allocation3]   ;;  %vm211_vm3 = vcmask 24576  }
 0x142   :  { %v199_v23 = vpop.xlane.xlu0 %198 }
 0x143   :  { %v200_v24 = vrot.slane %v199_v23, 4 }
 0x145   :  { %v201_v25 = vadd.f32 %v200_v24, %v199_v23 }
 0x147   :  { %v202_v26 = vrot.slane %v201_v25, 2 }
 0x149   :  { %v203_v27 = vadd.f32 %v202_v26, %v201_v25 }
 0x14b   :  { %v204_v28 = vrot.slane %v203_v27, 1 }
 0x14d   :  { %v205_v29 = vadd.f32 %v204_v28, %v203_v27 }
 0x14f   :  { %307 = vpush %v205_v29 }
 0x180   :  { %s308_s10 = spop %307 }
 0x181   :  { %v207_v30 = vstv %s308_s10 }
 0x182   :  { %v208_v31 = vadd.f32 1e-08, %v207_v30 }
 0x184   :  { %318 = vrcp.f32 %v208_v31 }
 0x187   :  { %v192_v32 = vpop.f32.mrb[0].mxu0 }
 0x188   :  { %v282_v33 = vpop.f32.mrb[1].mxu0 }
 0x18e   :  { %v319_v34 = vpop.eup %318 }
 0x18f   :  { %v210_v35 = vmul.f32 %v319_v34, %v192_v32 }
 0x191   :  { %212 = vst.msk [vmem:[%s489_s4] sm:$0x1] %vm211_vm3, %v210_v35 }
 0x192   :  { %342 = dma.done.wait [#allocation3], 16  }
 0x193   :  { %343 = vsyncadd [#allocation3], 4294967280 }
 0x194   :  { %230 = vsyncpa [#allocation3], 1 }

</bundles_post_ra>
